<compile_context>
chip_gen: v5e
topology: v5e:2x2
jax: 0.10.0
libtpu: 0.0.40
codegen_flags: <defaults>
</compile_context>

<pallas_src>
import jax
import jax.numpy as jnp
from jax.experimental import pallas as pl
from jax.experimental.pallas import tpu as pltpu

EPS = 1e-5  # nn.InstanceNorm2d default


def _downsample_kernel(p_ref, w_ref, g_ref, beta_ref, o_ref):
    # p_ref   : (N, CKK, P)    im2col patches, channel-major / (kh,kw)-minor
    # w_ref   : (C_out, CKK)   conv weight as a matrix (PyTorch flatten order)
    # g_ref   : (C_out, 1)     instance-norm gamma
    # beta_ref: (C_out, 1)     instance-norm beta
    # o_ref   : (N, C_out, P)
    w = w_ref[...]
    gamma = g_ref[...]        # (C_out, 1)
    beta = beta_ref[...]      # (C_out, 1)

    n_batch = p_ref.shape[0]
    for n in range(n_batch):  # static, tiny batch -> unrolled inside one grid step
        # Conv as matmul on the MXU: (C_out, CKK) @ (CKK, P) -> (C_out, P).
        y = jnp.dot(w, p_ref[n], preferred_element_type=jnp.float32)

        # InstanceNorm2d: per-(n, c) stats over spatial positions (last axis),
        # biased variance, eps=1e-5, affine.  (Conv bias omitted: a per-channel
        # constant cancels exactly under the mean subtraction.)
        mean = jnp.mean(y, axis=-1, keepdims=True)        # (C_out, 1) lane reduce
        cen = y - mean
        var = jnp.mean(cen * cen, axis=-1, keepdims=True)  # (C_out, 1)
        scale = gamma * jax.lax.rsqrt(var + EPS)           # per-channel, EUP rsqrt
        out = cen * scale + beta
        o_ref[n] = jnp.maximum(out, 0.0)                   # ReLU


def _im2col(x, kernel_size, stride, pad):
    """x: (N, C, H, W) -> patches (N, C*K*K, Ho*Wo), feature order (c, kh, kw)."""
    N, C, H, W = x.shape
    K = kernel_size
    Ho = (H + 2 * pad - K) // stride + 1
    Wo = (W + 2 * pad - K) // stride + 1
    xp = jnp.pad(x, ((0, 0), (0, 0), (pad, pad), (pad, pad)))
    cols = []
    for kh in range(K):
        for kw in range(K):
            cols.append(xp[:, :, kh:kh + stride * Ho:stride,
                               kw:kw + stride * Wo:stride])   # (N, C, Ho, Wo)
    # (N, C, K*K, Ho, Wo): c major, (kh*K+kw) minor -> matches weight flatten.
    patches = jnp.stack(cols, axis=2)
    patches = patches.reshape(N, C * K * K, Ho * Wo)          # (N, CKK, P) — no transpose
    return patches, Ho, Wo


def downsample_forward(x, weight, bias, gamma, beta, kernel_size=3, stride=2):
    """x: (N, C_in, H, W) NCHW.  weight: (C_out, C_in, K, K) (PyTorch layout)."""
    del bias  # per-channel conv bias is a no-op under InstanceNorm (cancels exactly)
    N, C_in, H, W = x.shape
    C_out = weight.shape[0]
    K = kernel_size
    pad = (K - 1) // 2

    patches, Ho, Wo = _im2col(x, K, stride, pad)              # (N, CKK, P)
    P = Ho * Wo
    CKK = C_in * K * K
    w_mat = weight.reshape(C_out, CKK)                        # (C_out, CKK)
    g_col = gamma.reshape(C_out, 1)
    beta_col = beta.reshape(C_out, 1)

    out = pl.pallas_call(
        _downsample_kernel,
        out_shape=jax.ShapeDtypeStruct((N, C_out, P), jnp.float32),
        grid_spec=pltpu.PrefetchScalarGridSpec(
            num_scalar_prefetch=0,
            grid=(1,),   # single grid step: per-step overhead dwarfs compute here
            in_specs=[
                pl.BlockSpec((N, CKK, P), lambda i: (0, 0, 0)),
                pl.BlockSpec((C_out, CKK), lambda i: (0, 0)),
                pl.BlockSpec((C_out, 1), lambda i: (0, 0)),
                pl.BlockSpec((C_out, 1), lambda i: (0, 0)),
            ],
            out_specs=pl.BlockSpec((N, C_out, P), lambda i: (0, 0, 0)),
        ),
        compiler_params=pltpu.CompilerParams(
            dimension_semantics=("arbitrary",)),
    )(patches, w_mat, g_col, beta_col)

    # (N, C_out, P) -> NCHW is a pure reshape (no transpose, no extra HBM pass).
    return out.reshape(N, C_out, Ho, Wo)


def _reference_forward(x, weight, bias, gamma, beta, stride=2):
    """Pure-JAX reference (lax conv + instance norm + relu) for validation."""
    y = jax.lax.conv_general_dilated(
        x, weight, window_strides=(stride, stride),
        padding=((1, 1), (1, 1)),
        dimension_numbers=("NCHW", "OIHW", "NCHW"))
    y = y + bias.reshape(1, -1, 1, 1)
    mean = y.mean(axis=(2, 3), keepdims=True)
    var = ((y - mean) ** 2).mean(axis=(2, 3), keepdims=True)
    yhat = (y - mean) / jnp.sqrt(var + EPS)
    out = yhat * gamma.reshape(1, -1, 1, 1) + beta.reshape(1, -1, 1, 1)
    return jnp.maximum(out, 0.0)


if __name__ == "__main__":
    # Small shapes consistent with the module: batch=2, in_channels=4, 16x16.
    N, C_in, H, W = 2, 4, 16, 16
    K, stride = 3, 2
    C_out = C_in * stride

    key = jax.random.PRNGKey(0)
    kx, kw, kb, kg, kbe = jax.random.split(key, 5)
    x = jax.random.normal(kx, (N, C_in, H, W), dtype=jnp.float32)
    # Deterministic synthetic parameters (PyTorch shapes):
    weight = jax.random.normal(kw, (C_out, C_in, K, K), dtype=jnp.float32) * 0.1
    bias = jax.random.normal(kb, (C_out,), dtype=jnp.float32) * 0.1
    gamma = 1.0 + 0.1 * jax.random.normal(kg, (C_out,), dtype=jnp.float32)
    beta = 0.1 * jax.random.normal(kbe, (C_out,), dtype=jnp.float32)

    out = downsample_forward(x, weight, bias, gamma, beta, K, stride)
    out = jax.block_until_ready(out)

    ref = jax.block_until_ready(
        _reference_forward(x, weight, bias, gamma, beta, stride))
    assert out.shape == (N, C_out, H // stride, W // stride), out.shape
    assert jnp.allclose(out, ref, atol=1e-4, rtol=1e-4), float(jnp.max(jnp.abs(out - ref)))

    print("KERNEL_OK")
</pallas_src>

<mosaic_0001>
module attributes {stable_mosaic.version = 11 : i64} {
  func.func @_downsample_kernel(%arg0: i32, %arg1: memref<2x36x64xf32, #tpu.memory_space<vmem>>, %arg2: memref<8x36xf32, #tpu.memory_space<vmem>>, %arg3: memref<8x1xf32, #tpu.memory_space<vmem>>, %arg4: memref<8x1xf32, #tpu.memory_space<vmem>>, %arg5: memref<2x8x64xf32, #tpu.memory_space<vmem>>) attributes {dimension_semantics = [#tpu.dimension_semantics<arbitrary>], iteration_bounds = array<i64: 1>, scalar_prefetch = 0 : i64, scratch_operands = 0 : i64, tpu.core_type = #tpu.core_type<tc>, window_params = [{pipeline_mode = #tpu.pipeline_mode<synchronous>, transform_indices = @transform_0, window_bounds = array<i64: 2, 36, 64>}, {pipeline_mode = #tpu.pipeline_mode<synchronous>, transform_indices = @transform_1, window_bounds = array<i64: 8, 36>}, {pipeline_mode = #tpu.pipeline_mode<synchronous>, transform_indices = @transform_2, window_bounds = array<i64: 8, 1>}, {pipeline_mode = #tpu.pipeline_mode<synchronous>, transform_indices = @transform_3, window_bounds = array<i64: 8, 1>}, {pipeline_mode = #tpu.pipeline_mode<synchronous>, transform_indices = @transform_4, window_bounds = array<i64: 2, 8, 64>}]} {
    %c0 = arith.constant 0 : index
    %c0_0 = arith.constant 0 : index
    %0 = vector.load %arg2[%c0, %c0_0] : memref<8x36xf32, #tpu.memory_space<vmem>>, vector<8x36xf32>
    %c0_1 = arith.constant 0 : index
    %c0_2 = arith.constant 0 : index
    %1 = vector.load %arg3[%c0_1, %c0_2] : memref<8x1xf32, #tpu.memory_space<vmem>>, vector<8x1xf32>
    %c0_3 = arith.constant 0 : index
    %c0_4 = arith.constant 0 : index
    %2 = vector.load %arg4[%c0_3, %c0_4] : memref<8x1xf32, #tpu.memory_space<vmem>>, vector<8x1xf32>
    %c0_5 = arith.constant 0 : index
    %c0_6 = arith.constant 0 : index
    %c0_7 = arith.constant 0 : index
    %3 = vector.load %arg1[%c0_5, %c0_6, %c0_7] : memref<2x36x64xf32, #tpu.memory_space<vmem>>, vector<1x36x64xf32>
    %4 = vector.shape_cast %3 : vector<1x36x64xf32> to vector<36x64xf32>
    %cst = arith.constant dense<0.000000e+00> : vector<8x64xf32>
    %5 = tpu.matmul %0, %4, %cst {dimension_numbers = #tpu.dot_dimension_numbers<[1], [0], [0], [1], [0, 0, 1, 1], [], []>} : vector<8x36xf32>, vector<36x64xf32>, vector<8x64xf32> -> vector<8x64xf32>
    %cst_8 = arith.constant dense<0.000000e+00> : vector<8xf32>
    %6 = vector.multi_reduction <add>, %5, %cst_8 [1] : vector<8x64xf32> to vector<8xf32>
    %7 = vector.shape_cast %6 : vector<8xf32> to vector<8x1xf32>
    %cst_9 = arith.constant 6.400000e+01 : f32
    %8 = vector.broadcast %cst_9 : f32 to vector<8x1xf32>
    %9 = arith.divf %7, %8 : vector<8x1xf32>
    %10 = vector.broadcast %9 : vector<8x1xf32> to vector<8x64xf32>
    %11 = arith.subf %5, %10 : vector<8x64xf32>
    %12 = arith.mulf %11, %11 : vector<8x64xf32>
    %cst_10 = arith.constant dense<0.000000e+00> : vector<8xf32>
    %13 = vector.multi_reduction <add>, %12, %cst_10 [1] : vector<8x64xf32> to vector<8xf32>
    %14 = vector.shape_cast %13 : vector<8xf32> to vector<8x1xf32>
    %cst_11 = arith.constant 6.400000e+01 : f32
    %15 = vector.broadcast %cst_11 : f32 to vector<8x1xf32>
    %16 = arith.divf %14, %15 : vector<8x1xf32>
    %cst_12 = arith.constant 9.99999974E-6 : f32
    %17 = vector.broadcast %cst_12 : f32 to vector<8x1xf32>
    %18 = arith.addf %16, %17 : vector<8x1xf32>
    %19 = math.rsqrt %18 : vector<8x1xf32>
    %20 = arith.mulf %1, %19 : vector<8x1xf32>
    %21 = vector.broadcast %20 : vector<8x1xf32> to vector<8x64xf32>
    %22 = arith.mulf %11, %21 : vector<8x64xf32>
    %23 = vector.broadcast %2 : vector<8x1xf32> to vector<8x64xf32>
    %24 = arith.addf %22, %23 : vector<8x64xf32>
    %cst_13 = arith.constant 0.000000e+00 : f32
    %25 = vector.broadcast %cst_13 : f32 to vector<8x64xf32>
    %26 = arith.maximumf %24, %25 : vector<8x64xf32>
    %c0_14 = arith.constant 0 : index
    %c0_15 = arith.constant 0 : index
    %c0_16 = arith.constant 0 : index
    %27 = vector.load %arg5[%c0_14, %c0_15, %c0_16] : memref<2x8x64xf32, #tpu.memory_space<vmem>>, vector<1x8x64xf32>
    %28 = vector.shape_cast %27 : vector<1x8x64xf32> to vector<8x64xf32>
    %29 = vector.shape_cast %26 : vector<8x64xf32> to vector<1x8x64xf32>
    tpu.vector_store %arg5[%c0_14, %c0_15, %c0_16], %29 {strides = array<i32>} : memref<2x8x64xf32, #tpu.memory_space<vmem>>, vector<1x8x64xf32>,
    %c1 = arith.constant 1 : index
    %c0_17 = arith.constant 0 : index
    %c0_18 = arith.constant 0 : index
    %30 = vector.load %arg1[%c1, %c0_17, %c0_18] : memref<2x36x64xf32, #tpu.memory_space<vmem>>, vector<1x36x64xf32>
    %31 = vector.shape_cast %30 : vector<1x36x64xf32> to vector<36x64xf32>
    %cst_19 = arith.constant dense<0.000000e+00> : vector<8x64xf32>
    %32 = tpu.matmul %0, %31, %cst_19 {dimension_numbers = #tpu.dot_dimension_numbers<[1], [0], [0], [1], [0, 0, 1, 1], [], []>} : vector<8x36xf32>, vector<36x64xf32>, vector<8x64xf32> -> vector<8x64xf32>
    %cst_20 = arith.constant dense<0.000000e+00> : vector<8xf32>
    %33 = vector.multi_reduction <add>, %32, %cst_20 [1] : vector<8x64xf32> to vector<8xf32>
    %34 = vector.shape_cast %33 : vector<8xf32> to vector<8x1xf32>
    %cst_21 = arith.constant 6.400000e+01 : f32
    %35 = vector.broadcast %cst_21 : f32 to vector<8x1xf32>
    %36 = arith.divf %34, %35 : vector<8x1xf32>
    %37 = vector.broadcast %36 : vector<8x1xf32> to vector<8x64xf32>
    %38 = arith.subf %32, %37 : vector<8x64xf32>
    %39 = arith.mulf %38, %38 : vector<8x64xf32>
    %cst_22 = arith.constant dense<0.000000e+00> : vector<8xf32>
    %40 = vector.multi_reduction <add>, %39, %cst_22 [1] : vector<8x64xf32> to vector<8xf32>
    %41 = vector.shape_cast %40 : vector<8xf32> to vector<8x1xf32>
    %cst_23 = arith.constant 6.400000e+01 : f32
    %42 = vector.broadcast %cst_23 : f32 to vector<8x1xf32>
    %43 = arith.divf %41, %42 : vector<8x1xf32>
    %cst_24 = arith.constant 9.99999974E-6 : f32
    %44 = vector.broadcast %cst_24 : f32 to vector<8x1xf32>
    %45 = arith.addf %43, %44 : vector<8x1xf32>
    %46 = math.rsqrt %45 : vector<8x1xf32>
    %47 = arith.mulf %1, %46 : vector<8x1xf32>
    %48 = vector.broadcast %47 : vector<8x1xf32> to vector<8x64xf32>
    %49 = arith.mulf %38, %48 : vector<8x64xf32>
    %50 = vector.broadcast %2 : vector<8x1xf32> to vector<8x64xf32>
    %51 = arith.addf %49, %50 : vector<8x64xf32>
    %cst_25 = arith.constant 0.000000e+00 : f32
    %52 = vector.broadcast %cst_25 : f32 to vector<8x64xf32>
    %53 = arith.maximumf %51, %52 : vector<8x64xf32>
    %c1_26 = arith.constant 1 : index
    %c0_27 = arith.constant 0 : index
    %c0_28 = arith.constant 0 : index
    %54 = vector.load %arg5[%c1_26, %c0_27, %c0_28] : memref<2x8x64xf32, #tpu.memory_space<vmem>>, vector<1x8x64xf32>
    %55 = vector.shape_cast %54 : vector<1x8x64xf32> to vector<8x64xf32>
    %56 = vector.shape_cast %53 : vector<8x64xf32> to vector<1x8x64xf32>
    tpu.vector_store %arg5[%c1_26, %c0_27, %c0_28], %56 {strides = array<i32>} : memref<2x8x64xf32, #tpu.memory_space<vmem>>, vector<1x8x64xf32>,
    return
  }
  func.func @transform_0(%arg0: i32) -> (i32, i32, i32) {
    %c0_i32 = arith.constant 0 : i32
    %c0_i32_0 = arith.constant 0 : i32
    %c0_i32_1 = arith.constant 0 : i32
    %c0_i32_2 = arith.constant 0 : i32
    return %c0_i32, %c0_i32_0, %c0_i32_1 : i32, i32, i32
  }
  func.func @transform_1(%arg0: i32) -> (i32, i32) {
    %c0_i32 = arith.constant 0 : i32
    %c0_i32_0 = arith.constant 0 : i32
    %c0_i32_1 = arith.constant 0 : i32
    return %c0_i32, %c0_i32_0 : i32, i32
  }
  func.func @transform_2(%arg0: i32) -> (i32, i32) {
    %c0_i32 = arith.constant 0 : i32
    %c0_i32_0 = arith.constant 0 : i32
    %c0_i32_1 = arith.constant 0 : i32
    return %c0_i32, %c0_i32_0 : i32, i32
  }
  func.func @transform_3(%arg0: i32) -> (i32, i32) {
    %c0_i32 = arith.constant 0 : i32
    %c0_i32_0 = arith.constant 0 : i32
    %c0_i32_1 = arith.constant 0 : i32
    return %c0_i32, %c0_i32_0 : i32, i32
  }
  func.func @transform_4(%arg0: i32) -> (i32, i32, i32) {
    %c0_i32 = arith.constant 0 : i32
    %c0_i32_0 = arith.constant 0 : i32
    %c0_i32_1 = arith.constant 0 : i32
    %c0_i32_2 = arith.constant 0 : i32
    return %c0_i32, %c0_i32_0, %c0_i32_1 : i32, i32, i32
  }
}

</mosaic_0001>

<bundles_post_ra>
// kernel: tpu_custom_call.1
= control target key start
LH: loop header
LB: loop body
LE: loop exit
PB: predicated region body
PF: predicated region fallthrough
CT: control target
= control target key end

     0   :  { %vm30_vm0 = vcmask 1043456   ;;  %s303_s0 = inlined_call_operand.vmem [shape: f32[2,36,64], index: 0, kind: input, shape index: {}]   ;;  %s304_s1 = inlined_call_operand.vmem [shape: f32[8,36], index: 1, kind: input, shape index: {}]   ;;  %s305_s2 = inlined_call_operand.vmem [shape: f32[8,1], index: 2, kind: input, shape index: {}]   ;;  %s306_s3 = inlined_call_operand.vmem [shape: f32[8,1], index: 3, kind: input, shape index: {}]   ;;  %s307_s4 = inlined_call_operand.hbm [shape: f32[2,8,64], index: 4, kind: output, shape index: {}]  }
   0x1   :  { %v25_v0 = vld [vmem:[%s303_s0 + $0x20] sm:$0xf]  ;;  %v24_v1 = vld [vmem:[%s303_s0 + $0x18] sm:$0xff]  ;;  %v183_v2 = vld [vmem:[%s303_s0 + $0x48] sm:$0xf] }
   0x2   :  { %177 = vmatpush.msk.msra.mxu0 %vm30_vm0, %v25_v0  ;;  %v23_v3 = vld [vmem:[%s303_s0 + $0x10] sm:$0xff]  ;;  %184 = vmatpush.msk.msra.mxu1 %vm30_vm0, %v183_v2  ;;  %v182_v4 = vld [vmem:[%s303_s0 + $0x40] sm:$0xff]  ;;  %v181_v5 = vld [vmem:[%s303_s0 + $0x38] sm:$0xff] }
   0x4   :  { %46 = vmatpush.msra.mxu0 %v24_v1 }
   0x5   :  { %9 = vsyncpa [#allocation3], 0  ;;  %v22_v6 = vld [vmem:[%s303_s0 + $0x8] sm:$0xff]  ;;  %119 = vmatpush.msra.mxu1 %v182_v4  ;;  %v180_v7 = vld [vmem:[%s303_s0 + $0x30] sm:$0xff]  ;;  %vm26_vm1 = vcmask 293888   ;;  %vm54_vm2 = vcmask 523264  }
   0x6   :  { %47 = vmatpush.msra.mxu0 %v23_v3  ;;  %v21_v8 = vld [vmem:[%s303_s0] sm:$0xff]  ;;  %v179_v10 = vld [vmem:[%s303_s0 + $0x28] sm:$0xff]  ;;  %v225_v15 = vmov 64.0   ;;  %v226_v32 = vmov 0   ;;  %s165_s15 = sshll.u32 %s307_s4, 4  ;;  %s228_s16 = smov 128   ;;  %s166_s15 = int_to_ptr.hbm [resolvable:$true] %s165_s15 }
   0x7   :  { %120 = vmatpush.msra.mxu1 %v181_v5  ;;  %v18_v9 = vld [vmem:[%s304_s1] sm:$0xff]  ;;  %193 = vrcp.f32 %v225_v15  ;;  %192 = vset.pattern.permute.xlu0 %v226_v32  ;;  %s229_s17 = smov 8  }
   0x8   :  { %48 = vmatpush.msra.mxu0 %v22_v6  ;;  %v20_v33 = vld [vmem:[%s306_s3] sm:$0xff]  ;;  %191 = vset.pattern.permute.xlu2 %v226_v32 }
   0x9   :  { %121 = vmatpush.msra.mxu1 %v180_v7  ;;  %v19_v47 = vld [vmem:[%s305_s2] sm:$0xff]  ;;  %s227_s2 = smov [#allocation2]  }
   0xa   :  { %49 = vmatpush.msra.mxu0 %v21_v8  ;;  %s163_s12 = sshll.u32 %s227_s2, 4  ;;  %s164_s12 = int_to_ptr.vmem [resolvable:$true] %s163_s12 }
   0xb   :  { %178 = vmatmul.msk.f32.vlgmr.msra.gmra.mxu0 %vm26_vm1, %v18_v9  ;;  %122 = vmatpush.msra.mxu1 %v179_v10 }
   0xc   :  { %185 = vmatmul.msk.f32.vlgmr.msra.gmra.mxu1 %vm26_vm1, %v18_v9 }
   0xd   :  { %v194_v16 = vpop.eup %193 }
   0xe   :  { %v59_v17 = vmul.f32 64.0, %v194_v16  ;;  %vm63_vm3 = vweird.f32 %v194_v16 }
  0x10   :  { %v60_v18 = vsub.f32 1.0, %v59_v17 }
  0x12   :  { %v61_v19 = vmul.f32 %v194_v16, %v60_v18 }
  0x14   :  { %v62_v20 = vadd.f32 %v194_v16, %v61_v19 }
  0x16   :  { %v64_v21 = vsel %vm63_vm3, %v194_v16, %v62_v20 }
  0x88   :  { %v51_v11 = vpop.f32.mrf.mxu0 }
  0x89   :  { %v55_v12 = vsel %vm54_vm2, %v51_v11, 0.0  ;;  %v124_v13 = vpop.f32.mrf.mxu1 }
  0x8a   :  { %56 = vadd.xlane.f32.xlu0 %v55_v12  ;;  %v127_v14 = vsel %vm54_vm2, %v124_v13, 0.0 }
  0x92   :  { %128 = vadd.xlane.f32.xlu0 %v127_v14 }
  0xa6   :  { %92 = vperm.xlu0 %192, %v20_v33  }
  0xfd   :  { %v57_v22 = vpop.xlane.xlu0 %56 }
  0xfe   :  { %v65_v23 = vmul.f32 %v64_v21, %v57_v22 }
 0x100   :  { %v66_v24 = vsub.f32 %v51_v11, %v65_v23 }
 0x102   :  { %v67_v25 = vmul.f32 %v66_v24, %v66_v24 }
 0x104   :  { %v68_v26 = vsel %vm54_vm2, %v67_v25, 0.0 }
 0x105   :  { %69 = vadd.xlane.f32.xlu1 %v68_v26  ;;  %v129_v27 = vpop.xlane.xlu0 %128 }
 0x106   :  { %v130_v28 = vmul.f32 %v129_v27, %v64_v21 }
 0x108   :  { %v131_v29 = vsub.f32 %v124_v13, %v130_v28 }
 0x10a   :  { %v132_v30 = vmul.f32 %v131_v29, %v131_v29 }
 0x10c   :  { %v133_v31 = vsel %vm54_vm2, %v132_v30, 0.0 }
 0x10d   :  { %134 = vadd.xlane.f32.xlu1 %v133_v31 }
 0x118   :  { %v93_v58 = vpop.permute.xlu0 %92 }
 0x178   :  { %v70_v34 = vpop.xlane.xlu1 %69 }
 0x179   :  { %v71_v35 = vmul.f32 %v70_v34, %v64_v21 }
 0x17b   :  { %v72_v36 = vadd.f32 1e-05, %v71_v35 }
 0x17d   :  { %195 = vrsqrt.f32 %v72_v36  ;;  %vm79_vm5 = vweird.f32 %v72_v36 }
 0x180   :  { %v135_v37 = vpop.xlane.xlu1 %134 }
 0x181   :  { %v136_v38 = vmul.f32 %v135_v37, %v64_v21 }
 0x183   :  { %v196_v39 = vpop.eup %195  ;;  %v137_v40 = vadd.f32 1e-05, %v136_v38 }
 0x184   :  { %v74_v41 = vmul.f32 %v196_v39, %v72_v36  ;;  %vm80_vm4 = vweird.f32 %v196_v39 }
 0x185   :  { %197 = vrsqrt.f32 %v137_v40  ;;  %vm81_vm6 = vmor %vm79_vm5, %vm80_vm4  ;;  %vm144_vm8 = vweird.f32 %v137_v40 }
 0x186   :  { %v75_v42 = vmul.f32 %v196_v39, %v74_v41 }
 0x188   :  { %v76_v43 = vmul.f32 0.5, %v75_v42 }
 0x18a   :  { %v77_v44 = vsub.f32 1.5, %v76_v43 }
 0x18b   :  { %v198_v45 = vpop.eup %197 }
 0x18c   :  { %v139_v46 = vmul.f32 %v198_v45, %v137_v40  ;;  %v78_v48 = vmul.f32 %v196_v39, %v77_v44  ;;  %vm145_vm7 = vweird.f32 %v198_v45 }
 0x18d   :  { %vm146_vm9 = vmor %vm144_vm8, %vm145_vm7 }
 0x18e   :  { %v140_v49 = vmul.f32 %v198_v45, %v139_v46  ;;  %v82_v50 = vsel %vm81_vm6, %v196_v39, %v78_v48 }
 0x18f   :  { %v83_v51 = vmul.f32 %v82_v50, %v19_v47 }
 0x190   :  { %v141_v52 = vmul.f32 0.5, %v140_v49 }
 0x191   :  { %86 = vperm.xlu2 %191, %v83_v51  }
 0x192   :  { %v142_v53 = vsub.f32 1.5, %v141_v52 }
 0x194   :  { %v143_v54 = vmul.f32 %v198_v45, %v142_v53 }
 0x196   :  { %v147_v55 = vsel %vm146_vm9, %v198_v45, %v143_v54 }
 0x197   :  { %v148_v56 = vmul.f32 %v147_v55, %v19_v47 }
 0x199   :  { %151 = vperm.xlu2 %191, %v148_v56  }
 0x1eb   :  { %v87_v57 = vpop.permute.xlu2 %86 }
 0x1ec   :  { %v89_v59 = vmul.f32 %v87_v57, %v66_v24 }
 0x1ee   :  { %v95_v60 = vadd.f32 %v93_v58, %v89_v59 }
 0x1f0   :  { %v96_v61 = vmax.f32 %v95_v60, 0.0 }
 0x1f2   :  { %97 = vst.msk [vmem:[#allocation2] sm:$0xff] %vm54_vm2, %v96_v61 }
 0x1f3   :  { %v152_v62 = vpop.permute.xlu2 %151 }
 0x1f4   :  { %v154_v63 = vmul.f32 %v152_v62, %v131_v29 }
 0x1f6   :  { %v155_v0 = vadd.f32 %v154_v63, %v93_v58 }
 0x1f8   :  { %v156_v1 = vmax.f32 %v155_v0, 0.0 }
 0x1fa   :  { %158 = vst.msk [vmem:[#allocation2 + $0x8] sm:$0xff] %vm54_vm2, %v156_v1 }
 0x1fb   :  { %171 = dma.vmem_to_hbm [thread:$0]  %s164_s12, 256, %s166_s15, [#allocation3], %s228_s16, %s228_s16, %s229_s17  }
 0x1fc   :  { %223 = dma.done.wait [#allocation3], 256  }
 0x1fd   :  { %224 = vsyncadd [#allocation3], 4294967040 }
 0x1fe   :  { %176 = vsyncpa [#allocation3], 1 }

</bundles_post_ra>
